<compile_context>
chip_gen: v7x
topology: tpu7x:2x2x1
jax: 0.10.0
libtpu: 0.0.40
codegen_flags: <defaults>
</compile_context>

<pallas_src>
import math

import jax
import jax.numpy as jnp
from jax.experimental import pallas as pl
from jax.experimental.pallas import tpu as pltpu

HIDDEN = 50
IN_DIM = 2
OUT_DIM = 4
TM_DEFAULT = 256  # batch tile (lanes per grid step); multiple of 256 for v7x


def _generator_kernel(x_ref,
                      w1_ref, b1_ref,
                      w2_ref, b2_ref,
                      w3_ref, b3_ref,
                      w4_ref, b4_ref,
                      w5_ref, b5_ref,
                      o_ref):
    # Feature-major: x is (IN_DIM, TM), hidden is (HIDDEN, TM), out is (OUT_DIM, TM).
    h = x_ref[...]
    h = jnp.tanh(jnp.dot(w1_ref[...], h, preferred_element_type=jnp.float32)
                 + b1_ref[...])
    h = jnp.tanh(jnp.dot(w2_ref[...], h, preferred_element_type=jnp.float32)
                 + b2_ref[...])
    h = jnp.tanh(jnp.dot(w3_ref[...], h, preferred_element_type=jnp.float32)
                 + b3_ref[...])
    h = jnp.tanh(jnp.dot(w4_ref[...], h, preferred_element_type=jnp.float32)
                 + b4_ref[...])
    y = jnp.dot(w5_ref[...], h, preferred_element_type=jnp.float32) + b5_ref[...]

    # Row-wise post-processing on the lane-dense (OUT_DIM, TM) tile:
    #   rows 0,1 -> exp ; row 3 -> tanh * pi/2 ; row 2 pass-through.
    row = jax.lax.broadcasted_iota(jnp.int32, y.shape, dimension=0)
    y_exp = jnp.exp(y)
    y_tanh = jnp.tanh(y) * (math.pi / 2.0)
    out = jnp.where(row <= 1, y_exp, jnp.where(row == 3, y_tanh, y))

    o_ref[...] = out.astype(o_ref.dtype)


def generator_forward(a, params, *, tm=TM_DEFAULT):
    """a: tuple of (N, k_i) float32 arrays, concatenated along axis 1 to (N, 2).

    Returns (N, 4) float32, matching the PyTorch module's forward semantics.
    """
    x = jnp.concatenate(a, axis=1).astype(jnp.float32)  # (N, IN_DIM)
    n = x.shape[0]
    assert x.shape[1] == IN_DIM

    # Pad the batch up to a multiple of the tile; padded rows compute garbage
    # (finite, since inputs are zero) and are sliced off afterwards.
    n_tiles = pl.cdiv(n, tm)
    n_pad = n_tiles * tm
    x_fm = jnp.zeros((IN_DIM, n_pad), jnp.float32).at[:, :n].set(x.T)

    (w1, b1), (w2, b2), (w3, b3), (w4, b4), (w5, b5) = params

    def resident_spec(shape):
        # Whole array, same block every grid step -> stays VMEM-resident.
        return pl.BlockSpec(shape, lambda i: (0, 0))

    grid = (n_tiles,)

    out_fm = pl.pallas_call(
        _generator_kernel,
        out_shape=jax.ShapeDtypeStruct((OUT_DIM, n_pad), jnp.float32),
        grid_spec=pltpu.PrefetchScalarGridSpec(
            num_scalar_prefetch=0,
            grid=grid,
            in_specs=[
                pl.BlockSpec((IN_DIM, tm), lambda i: (0, i)),   # x tile (lane-dense)
                resident_spec(w1.shape), resident_spec(b1.shape),
                resident_spec(w2.shape), resident_spec(b2.shape),
                resident_spec(w3.shape), resident_spec(b3.shape),
                resident_spec(w4.shape), resident_spec(b4.shape),
                resident_spec(w5.shape), resident_spec(b5.shape),
            ],
            out_specs=pl.BlockSpec((OUT_DIM, tm), lambda i: (0, i)),  # lane-dense out
        ),
        compiler_params=pltpu.CompilerParams(
            dimension_semantics=("parallel",),
        ),
    )(x_fm, w1, b1, w2, b2, w3, b3, w4, b4, w5, b5)

    return out_fm[:, :n].T  # back to (N, OUT_DIM) for the caller


def init_params(key):
    """Deterministic init mimicking torch.nn.Linear: U(-1/sqrt(fan_in), 1/sqrt(fan_in)).
    Weights stored as (fan_out, fan_in) (PyTorch layout); biases as (fan_out, 1)."""
    dims = [(IN_DIM, HIDDEN), (HIDDEN, HIDDEN), (HIDDEN, HIDDEN),
            (HIDDEN, HIDDEN), (HIDDEN, OUT_DIM)]
    params = []
    for fan_in, fan_out in dims:
        key, kw, kb = jax.random.split(key, 3)
        bound = 1.0 / math.sqrt(fan_in)
        w = jax.random.uniform(kw, (fan_out, fan_in), jnp.float32, -bound, bound)
        b = jax.random.uniform(kb, (fan_out, 1), jnp.float32, -bound, bound)
        params.append((w, b))
    return params


def reference_forward(a, params):
    x = jnp.concatenate(a, axis=1).astype(jnp.float32)
    h = x
    for i, (w, b) in enumerate(params):
        h = h @ w.T + b.reshape(1, -1)
        if i < len(params) - 1:
            h = jnp.tanh(h)
    c0 = jnp.exp(h[:, 0])
    c1 = jnp.exp(h[:, 1])
    c2 = h[:, 2]
    c3 = jnp.tanh(h[:, 3]) * (math.pi / 2.0)
    return jnp.stack([c0, c1, c2, c3], axis=1)


if __name__ == "__main__":
    key = jax.random.PRNGKey(0)
    k_params, k_x, k_t = jax.random.split(key, 3)

    params = init_params(k_params)

    # Test 1: tiny batch (exercises padding of a single tile).
    N1 = 8
    x_coord = jax.random.normal(k_x, (N1, 1), dtype=jnp.float32)
    t_coord = jax.random.normal(k_t, (N1, 1), dtype=jnp.float32)
    a1 = (x_coord, t_coord)
    out1 = jax.block_until_ready(generator_forward(a1, params))
    ref1 = reference_forward(a1, params)
    assert out1.shape == (N1, OUT_DIM)
    assert jnp.allclose(out1, ref1, atol=1e-5, rtol=1e-5), "mismatch vs reference (N=8)"

    # Test 2: non-tile-multiple batch across several grid steps (tm=128).
    N2 = 300
    k_x2, k_t2 = jax.random.split(jax.random.PRNGKey(1))
    a2 = (jax.random.normal(k_x2, (N2, 1), dtype=jnp.float32),
          jax.random.normal(k_t2, (N2, 1), dtype=jnp.float32))
    out2 = jax.block_until_ready(generator_forward(a2, params, tm=128))
    ref2 = reference_forward(a2, params)
    assert out2.shape == (N2, OUT_DIM)
    assert jnp.allclose(out2, ref2, atol=1e-5, rtol=1e-5), "mismatch vs reference (N=300)"

    print("KERNEL_OK")
</pallas_src>

<mosaic_0001>
module attributes {stable_mosaic.version = 11 : i64} {
  func.func @_generator_kernel(%arg0: i32, %arg1: memref<2x256xf32, #tpu.memory_space<vmem>>, %arg2: memref<50x2xf32, #tpu.memory_space<vmem>>, %arg3: memref<50x1xf32, #tpu.memory_space<vmem>>, %arg4: memref<50x50xf32, #tpu.memory_space<vmem>>, %arg5: memref<50x1xf32, #tpu.memory_space<vmem>>, %arg6: memref<50x50xf32, #tpu.memory_space<vmem>>, %arg7: memref<50x1xf32, #tpu.memory_space<vmem>>, %arg8: memref<50x50xf32, #tpu.memory_space<vmem>>, %arg9: memref<50x1xf32, #tpu.memory_space<vmem>>, %arg10: memref<4x50xf32, #tpu.memory_space<vmem>>, %arg11: memref<4x1xf32, #tpu.memory_space<vmem>>, %arg12: memref<4x256xf32, #tpu.memory_space<vmem>>) attributes {dimension_semantics = [#tpu.dimension_semantics<parallel>], iteration_bounds = array<i64: 1>, scalar_prefetch = 0 : i64, scratch_operands = 0 : i64, tpu.core_type = #tpu.core_type<tc>, window_params = [{transform_indices = @transform_0, window_bounds = array<i64: 2, 256>}, {pipeline_mode = #tpu.pipeline_mode<synchronous>, transform_indices = @transform_1, window_bounds = array<i64: 50, 2>}, {pipeline_mode = #tpu.pipeline_mode<synchronous>, transform_indices = @transform_2, window_bounds = array<i64: 50, 1>}, {pipeline_mode = #tpu.pipeline_mode<synchronous>, transform_indices = @transform_3, window_bounds = array<i64: 50, 50>}, {pipeline_mode = #tpu.pipeline_mode<synchronous>, transform_indices = @transform_4, window_bounds = array<i64: 50, 1>}, {pipeline_mode = #tpu.pipeline_mode<synchronous>, transform_indices = @transform_5, window_bounds = array<i64: 50, 50>}, {pipeline_mode = #tpu.pipeline_mode<synchronous>, transform_indices = @transform_6, window_bounds = array<i64: 50, 1>}, {pipeline_mode = #tpu.pipeline_mode<synchronous>, transform_indices = @transform_7, window_bounds = array<i64: 50, 50>}, {pipeline_mode = #tpu.pipeline_mode<synchronous>, transform_indices = @transform_8, window_bounds = array<i64: 50, 1>}, {pipeline_mode = #tpu.pipeline_mode<synchronous>, transform_indices = @transform_9, window_bounds = array<i64: 4, 50>}, {pipeline_mode = #tpu.pipeline_mode<synchronous>, transform_indices = @transform_10, window_bounds = array<i64: 4, 1>}, {transform_indices = @transform_11, window_bounds = array<i64: 4, 256>}]} {
    %c0 = arith.constant 0 : index
    %c0_0 = arith.constant 0 : index
    %0 = vector.load %arg1[%c0, %c0_0] : memref<2x256xf32, #tpu.memory_space<vmem>>, vector<2x256xf32>
    %c0_1 = arith.constant 0 : index
    %c0_2 = arith.constant 0 : index
    %1 = vector.load %arg2[%c0_1, %c0_2] : memref<50x2xf32, #tpu.memory_space<vmem>>, vector<50x2xf32>
    %cst = arith.constant dense<0.000000e+00> : vector<50x256xf32>
    %2 = tpu.matmul %1, %0, %cst {dimension_numbers = #tpu.dot_dimension_numbers<[1], [0], [0], [1], [0, 0, 1, 1], [], []>} : vector<50x2xf32>, vector<2x256xf32>, vector<50x256xf32> -> vector<50x256xf32>
    %c0_3 = arith.constant 0 : index
    %c0_4 = arith.constant 0 : index
    %3 = vector.load %arg3[%c0_3, %c0_4] : memref<50x1xf32, #tpu.memory_space<vmem>>, vector<50x1xf32>
    %4 = vector.broadcast %3 : vector<50x1xf32> to vector<50x256xf32>
    %5 = arith.addf %2, %4 : vector<50x256xf32>
    %6 = math.tanh %5 : vector<50x256xf32>
    %c0_5 = arith.constant 0 : index
    %c0_6 = arith.constant 0 : index
    %7 = vector.load %arg4[%c0_5, %c0_6] : memref<50x50xf32, #tpu.memory_space<vmem>>, vector<50x50xf32>
    %cst_7 = arith.constant dense<0.000000e+00> : vector<50x256xf32>
    %8 = tpu.matmul %7, %6, %cst_7 {dimension_numbers = #tpu.dot_dimension_numbers<[1], [0], [0], [1], [0, 0, 1, 1], [], []>} : vector<50x50xf32>, vector<50x256xf32>, vector<50x256xf32> -> vector<50x256xf32>
    %c0_8 = arith.constant 0 : index
    %c0_9 = arith.constant 0 : index
    %9 = vector.load %arg5[%c0_8, %c0_9] : memref<50x1xf32, #tpu.memory_space<vmem>>, vector<50x1xf32>
    %10 = vector.broadcast %9 : vector<50x1xf32> to vector<50x256xf32>
    %11 = arith.addf %8, %10 : vector<50x256xf32>
    %12 = math.tanh %11 : vector<50x256xf32>
    %c0_10 = arith.constant 0 : index
    %c0_11 = arith.constant 0 : index
    %13 = vector.load %arg6[%c0_10, %c0_11] : memref<50x50xf32, #tpu.memory_space<vmem>>, vector<50x50xf32>
    %cst_12 = arith.constant dense<0.000000e+00> : vector<50x256xf32>
    %14 = tpu.matmul %13, %12, %cst_12 {dimension_numbers = #tpu.dot_dimension_numbers<[1], [0], [0], [1], [0, 0, 1, 1], [], []>} : vector<50x50xf32>, vector<50x256xf32>, vector<50x256xf32> -> vector<50x256xf32>
    %c0_13 = arith.constant 0 : index
    %c0_14 = arith.constant 0 : index
    %15 = vector.load %arg7[%c0_13, %c0_14] : memref<50x1xf32, #tpu.memory_space<vmem>>, vector<50x1xf32>
    %16 = vector.broadcast %15 : vector<50x1xf32> to vector<50x256xf32>
    %17 = arith.addf %14, %16 : vector<50x256xf32>
    %18 = math.tanh %17 : vector<50x256xf32>
    %c0_15 = arith.constant 0 : index
    %c0_16 = arith.constant 0 : index
    %19 = vector.load %arg8[%c0_15, %c0_16] : memref<50x50xf32, #tpu.memory_space<vmem>>, vector<50x50xf32>
    %cst_17 = arith.constant dense<0.000000e+00> : vector<50x256xf32>
    %20 = tpu.matmul %19, %18, %cst_17 {dimension_numbers = #tpu.dot_dimension_numbers<[1], [0], [0], [1], [0, 0, 1, 1], [], []>} : vector<50x50xf32>, vector<50x256xf32>, vector<50x256xf32> -> vector<50x256xf32>
    %c0_18 = arith.constant 0 : index
    %c0_19 = arith.constant 0 : index
    %21 = vector.load %arg9[%c0_18, %c0_19] : memref<50x1xf32, #tpu.memory_space<vmem>>, vector<50x1xf32>
    %22 = vector.broadcast %21 : vector<50x1xf32> to vector<50x256xf32>
    %23 = arith.addf %20, %22 : vector<50x256xf32>
    %24 = math.tanh %23 : vector<50x256xf32>
    %c0_20 = arith.constant 0 : index
    %c0_21 = arith.constant 0 : index
    %25 = vector.load %arg10[%c0_20, %c0_21] : memref<4x50xf32, #tpu.memory_space<vmem>>, vector<4x50xf32>
    %cst_22 = arith.constant dense<0.000000e+00> : vector<4x256xf32>
    %26 = tpu.matmul %25, %24, %cst_22 {dimension_numbers = #tpu.dot_dimension_numbers<[1], [0], [0], [1], [0, 0, 1, 1], [], []>} : vector<4x50xf32>, vector<50x256xf32>, vector<4x256xf32> -> vector<4x256xf32>
    %c0_23 = arith.constant 0 : index
    %c0_24 = arith.constant 0 : index
    %27 = vector.load %arg11[%c0_23, %c0_24] : memref<4x1xf32, #tpu.memory_space<vmem>>, vector<4x1xf32>
    %28 = vector.broadcast %27 : vector<4x1xf32> to vector<4x256xf32>
    %29 = arith.addf %26, %28 : vector<4x256xf32>
    %30 = tpu.iota {dimensions = array<i32: 0>} : vector<4x256xi32>
    %31 = math.exp %29 : vector<4x256xf32>
    %32 = math.tanh %29 : vector<4x256xf32>
    %cst_25 = arith.constant 1.57079637 : f32
    %33 = vector.broadcast %cst_25 : f32 to vector<4x256xf32>
    %34 = arith.mulf %32, %33 : vector<4x256xf32>
    %c1_i32 = arith.constant 1 : i32
    %35 = vector.broadcast %c1_i32 : i32 to vector<4x256xi32>
    %36 = arith.cmpi sle, %30, %35 : vector<4x256xi32>
    %c3_i32 = arith.constant 3 : i32
    %37 = vector.broadcast %c3_i32 : i32 to vector<4x256xi32>
    %38 = arith.cmpi eq, %30, %37 : vector<4x256xi32>
    %39 = arith.select %38, %34, %29 : vector<4x256xi1>, vector<4x256xf32>
    %40 = arith.select %36, %31, %39 : vector<4x256xi1>, vector<4x256xf32>
    %c0_26 = arith.constant 0 : index
    %c0_27 = arith.constant 0 : index
    %41 = vector.load %arg12[%c0_26, %c0_27] : memref<4x256xf32, #tpu.memory_space<vmem>>, vector<4x256xf32>
    tpu.vector_store %arg12[%c0_26, %c0_27], %40 {strides = array<i32>} : memref<4x256xf32, #tpu.memory_space<vmem>>, vector<4x256xf32>,
    return
  }
  func.func @transform_0(%arg0: i32) -> (i32, i32) {
    %c0_i32 = arith.constant 0 : i32
    %c0_i32_0 = arith.constant 0 : i32
    return %c0_i32, %arg0 : i32, i32
  }
  func.func @transform_1(%arg0: i32) -> (i32, i32) {
    %c0_i32 = arith.constant 0 : i32
    %c0_i32_0 = arith.constant 0 : i32
    %c0_i32_1 = arith.constant 0 : i32
    return %c0_i32, %c0_i32_0 : i32, i32
  }
  func.func @transform_2(%arg0: i32) -> (i32, i32) {
    %c0_i32 = arith.constant 0 : i32
    %c0_i32_0 = arith.constant 0 : i32
    %c0_i32_1 = arith.constant 0 : i32
    return %c0_i32, %c0_i32_0 : i32, i32
  }
  func.func @transform_3(%arg0: i32) -> (i32, i32) {
    %c0_i32 = arith.constant 0 : i32
    %c0_i32_0 = arith.constant 0 : i32
    %c0_i32_1 = arith.constant 0 : i32
    return %c0_i32, %c0_i32_0 : i32, i32
  }
  func.func @transform_4(%arg0: i32) -> (i32, i32) {
    %c0_i32 = arith.constant 0 : i32
    %c0_i32_0 = arith.constant 0 : i32
    %c0_i32_1 = arith.constant 0 : i32
    return %c0_i32, %c0_i32_0 : i32, i32
  }
  func.func @transform_5(%arg0: i32) -> (i32, i32) {
    %c0_i32 = arith.constant 0 : i32
    %c0_i32_0 = arith.constant 0 : i32
    %c0_i32_1 = arith.constant 0 : i32
    return %c0_i32, %c0_i32_0 : i32, i32
  }
  func.func @transform_6(%arg0: i32) -> (i32, i32) {
    %c0_i32 = arith.constant 0 : i32
    %c0_i32_0 = arith.constant 0 : i32
    %c0_i32_1 = arith.constant 0 : i32
    return %c0_i32, %c0_i32_0 : i32, i32
  }
  func.func @transform_7(%arg0: i32) -> (i32, i32) {
    %c0_i32 = arith.constant 0 : i32
    %c0_i32_0 = arith.constant 0 : i32
    %c0_i32_1 = arith.constant 0 : i32
    return %c0_i32, %c0_i32_0 : i32, i32
  }
  func.func @transform_8(%arg0: i32) -> (i32, i32) {
    %c0_i32 = arith.constant 0 : i32
    %c0_i32_0 = arith.constant 0 : i32
    %c0_i32_1 = arith.constant 0 : i32
    return %c0_i32, %c0_i32_0 : i32, i32
  }
  func.func @transform_9(%arg0: i32) -> (i32, i32) {
    %c0_i32 = arith.constant 0 : i32
    %c0_i32_0 = arith.constant 0 : i32
    %c0_i32_1 = arith.constant 0 : i32
    return %c0_i32, %c0_i32_0 : i32, i32
  }
  func.func @transform_10(%arg0: i32) -> (i32, i32) {
    %c0_i32 = arith.constant 0 : i32
    %c0_i32_0 = arith.constant 0 : i32
    %c0_i32_1 = arith.constant 0 : i32
    return %c0_i32, %c0_i32_0 : i32, i32
  }
  func.func @transform_11(%arg0: i32) -> (i32, i32) {
    %c0_i32 = arith.constant 0 : i32
    %c0_i32_0 = arith.constant 0 : i32
    return %c0_i32, %arg0 : i32, i32
  }
}

</mosaic_0001>

<bundles_post_ra>
// kernel: tpu_custom_call.1
= control target key start
LH: loop header
LB: loop body
LE: loop exit
PB: predicated region body
PF: predicated region fallthrough
CT: control target
= control target key end

     0   :  { %vm120_vm0 = vcmask 1041408   ;;  %v1197_v2 = vmov 0.0   ;;  %vm98_vm1 = vcmask 15360   ;;  %v1198_v4 = vmov 0   ;;  %s1517_s0 = inlined_call_operand.vmem [shape: f32[2,256], index: 0, kind: input, shape index: {}]   ;;  %s1518_s1 = inlined_call_operand.vmem [shape: f32[50,2], index: 1, kind: input, shape index: {}]   ;;  %s1519_s2 = inlined_call_operand.vmem [shape: f32[50,1], index: 2, kind: input, shape index: {}]   ;;  %s1520_s3 = inlined_call_operand.vmem [shape: f32[50,50], index: 3, kind: input, shape index: {}]   ;;  %s1521_s4 = inlined_call_operand.vmem [shape: f32[50,1], index: 4, kind: input, shape index: {}]   ;;  %s1522_s5 = inlined_call_operand.vmem [shape: f32[50,50], index: 5, kind: input, shape index: {}]   ;;  %s1523_s6 = inlined_call_operand.vmem [shape: f32[50,1], index: 6, kind: input, shape index: {}]   ;;  %s1524_s7 = inlined_call_operand.vmem [shape: f32[50,50], index: 7, kind: input, shape index: {}]   ;;  %s1525_s8 = inlined_call_operand.vmem [shape: f32[50,1], index: 8, kind: input, shape index: {}]   ;;  %s1526_s9 = inlined_call_operand.vmem [shape: f32[4,50], index: 9, kind: input, shape index: {}]   ;;  %s1527_s10 = inlined_call_operand.vmem [shape: f32[4,1], index: 10, kind: input, shape index: {}]   ;;  %s1528_s11 = inlined_call_operand.hbm [shape: f32[4,256], index: 11, kind: output, shape index: {}]  }
   0x1   :  { %v960_v0 = vld.sshfl [vmem:[%s1517_s0] sm:$0x33 pattern:$0x76325410]  ;;  %189 = vmatprep.mubr.f32.mxu0 %v1197_v2  ;;  %387 = vmatprep.mubr.f32.mxu1 %v1197_v2  ;;  %v49_v6 = vld [vmem:[%s1519_s2 + $0x10] sm:$0xff]  ;;  %v48_v7 = vld [vmem:[%s1519_s2 + $0x8] sm:$0xff] }
   0x2   :  { %v97_v1 = vcombine.high %v960_v0, %v960_v0  ;;  %v40_v3 = vld [vmem:[%s1518_s1] sm:$0xff]  ;;  %1051 = vset.pattern.permute.xlu0 %v1198_v4  ;;  %1052 = vset.pattern.permute.xlu1 %v1198_v4  ;;  %v41_v8 = vld [vmem:[%s1518_s1 + $0x8] sm:$0xff]  ;;  %v50_v9 = vld [vmem:[%s1519_s2 + $0x18] sm:$0xff] }
   0x3   :  { %v47_v5 = vld [vmem:[%s1519_s2] sm:$0xff]  ;;  %66 = vperm.xlu1 %1052, %v49_v6   ;;  %v42_v11 = vld [vmem:[%s1518_s1 + $0x10] sm:$0xff]  ;;  %v52_v12 = vld [vmem:[%s1519_s2 + $0x28] sm:$0xff] }
   0x4   :  { %961 = vmatprep.subr.msk.mxu0 %vm120_vm0, %v97_v1  ;;  %56 = vperm.xlu0 %1051, %v47_v5   ;;  %v51_v10 = vld [vmem:[%s1519_s2 + $0x20] sm:$0xff]  ;;  %v53_v13 = vld [vmem:[%s1519_s2 + $0x30] sm:$0x3] }
   0x5   :  { %962 = vmatpush1.msk.msra.mxu0 %vm120_vm0, %v960_v0 }
   0x6   :  { %963 = vmatmul.mubr.msk.f32.vlgmr.msra.gmra.mrb[0].mxu0 %vm98_vm1, %v40_v3 }
   0x7   :  { %195 = vmatprep.mubr.f32.mxu0 %v1197_v2  ;;  %71 = vperm.xlu1 %1052, %v50_v9  }
   0x8   :  { %61 = vperm.xlu0 %1051, %v48_v7  }
   0xa   :  { %964 = vmatmul.mubr.msk.f32.gmra.mrb[2].mxu0 %vm98_vm1, %v41_v8 }
   0xb   :  { %201 = vmatprep.mubr.f32.mxu0 %v1197_v2  ;;  %81 = vperm.xlu1 %1052, %v52_v12  }
   0xc   :  { %76 = vperm.xlu0 %1051, %v51_v10  }
   0xe   :  { %965 = vmatmul.mubr.msk.f32.gmra.mrb[4].mxu0 %vm98_vm1, %v42_v11 }
   0xf   :  { %16 = vsyncpa [#allocation3], 0  ;;  %207 = vmatprep.mubr.f32.mxu0 %v1197_v2  ;;  %v43_v14 = vld [vmem:[%s1518_s1 + $0x18] sm:$0xff]  ;;  %v253_v15 = vld [vmem:[%s1521_s4] sm:$0xff]  ;;  %vm295_vm2 = vcmask 408576  }
  0x10   :  { %86 = vperm.xlu0 %1051, %v53_v13   ;;  %v254_v16 = vld [vmem:[%s1521_s4 + $0x8] sm:$0xff]  ;;  %262 = vperm.xlu1 %1052, %v253_v15   ;;  %v44_v17 = vld [vmem:[%s1518_s1 + $0x20] sm:$0xff]  ;;  %v255_v18 = vld [vmem:[%s1521_s4 + $0x10] sm:$0xff] }
  0x11   :  { %v256_v19 = vld [vmem:[%s1521_s4 + $0x18] sm:$0xff]  ;;  %v45_v20 = vld [vmem:[%s1518_s1 + $0x28] sm:$0xff]  ;;  %v257_v21 = vld [vmem:[%s1521_s4 + $0x20] sm:$0xff] }
  0x12   :  { %966 = vmatmul.mubr.msk.f32.gmra.mrb[6].mxu0 %vm98_vm1, %v43_v14  ;;  %v258_v22 = vld [vmem:[%s1521_s4 + $0x28] sm:$0xff]  ;;  %v46_v23 = vld [vmem:[%s1518_s1 + $0x30] sm:$0x3]  ;;  %v451_v25 = vld [vmem:[%s1523_s6] sm:$0xff] }
  0x13   :  { %213 = vmatprep.mubr.f32.mxu0 %v1197_v2  ;;  %v259_v24 = vld [vmem:[%s1521_s4 + $0x30] sm:$0x3]  ;;  %v452_v26 = vld [vmem:[%s1523_s6 + $0x8] sm:$0xff]  ;;  %v454_v28 = vld [vmem:[%s1523_s6 + $0x18] sm:$0xff] }
  0x14   :  { %267 = vperm.xlu0 %1051, %v254_v16   ;;  %272 = vperm.xlu1 %1052, %v255_v18   ;;  %v453_v27 = vld [vmem:[%s1523_s6 + $0x10] sm:$0xff]  ;;  %v455_v29 = vld [vmem:[%s1523_s6 + $0x20] sm:$0xff]  ;;  %v456_v30 = vld [vmem:[%s1523_s6 + $0x28] sm:$0xff] }
  0x15   :  { %v457_v31 = vld [vmem:[%s1523_s6 + $0x30] sm:$0x3]  ;;  %v648_v32 = vld [vmem:[%s1525_s8] sm:$0xff]  ;;  %v649_v33 = vld [vmem:[%s1525_s8 + $0x8] sm:$0xff] }
  0x16   :  { %967 = vmatmul.mubr.msk.f32.gmra.mrb[8].mxu0 %vm98_vm1, %v44_v17  ;;  %v650_v34 = vld [vmem:[%s1525_s8 + $0x10] sm:$0xff]  ;;  %v651_v35 = vld [vmem:[%s1525_s8 + $0x18] sm:$0xff]  ;;  %v652_v36 = vld [vmem:[%s1525_s8 + $0x20] sm:$0xff] }
  0x17   :  { %219 = vmatprep.mubr.f32.mxu0 %v1197_v2  ;;  %v653_v37 = vld [vmem:[%s1525_s8 + $0x28] sm:$0xff]  ;;  %v654_v38 = vld [vmem:[%s1525_s8 + $0x30] sm:$0x3]  ;;  %v839_v39 = vld [vmem:[%s1527_s10] sm:$0xf] }
  0x18   :  { %277 = vperm.xlu0 %1051, %v256_v19   ;;  %282 = vperm.xlu1 %1052, %v257_v21  }
  0x1a   :  { %968 = vmatmul.mubr.msk.f32.gmra.mrb[10].mxu0 %vm98_vm1, %v45_v20 }
  0x1b   :  { %225 = vmatprep.mubr.f32.mxu0 %v1197_v2 }
  0x1c   :  { %287 = vperm.xlu0 %1051, %v258_v22   ;;  %292 = vperm.xlu1 %1052, %v259_v24  }
  0x1e   :  { %969 = vmatmul.mubr.msk.f32.gmra.mrb[12].mxu0 %vm98_vm1, %v46_v23 }
  0x1f   :  { %584 = vmatprep.mubr.f32.mxu0 %v1197_v2 }
  0x20   :  { %460 = vperm.xlu0 %1051, %v451_v25   ;;  %465 = vperm.xlu1 %1052, %v452_v26  }
  0x24   :  { %470 = vperm.xlu0 %1051, %v453_v27   ;;  %475 = vperm.xlu1 %1052, %v454_v28  }
  0x28   :  { %480 = vperm.xlu0 %1051, %v455_v29   ;;  %485 = vperm.xlu1 %1052, %v456_v30  }
  0x2c   :  { %490 = vperm.xlu0 %1051, %v457_v31   ;;  %657 = vperm.xlu1 %1052, %v648_v32   ;;  %v246_v31 = vld [vmem:[%s1520_s3] sm:$0xff] }
  0x30   :  { %662 = vperm.xlu0 %1051, %v649_v33   ;;  %667 = vperm.xlu1 %1052, %v650_v34   ;;  %v247_v33 = vld [vmem:[%s1520_s3 + $0x8] sm:$0xff]  ;;  %v248_v34 = vld [vmem:[%s1520_s3 + $0x10] sm:$0xff] }
  0x34   :  { %672 = vperm.xlu0 %1051, %v651_v35   ;;  %677 = vperm.xlu1 %1052, %v652_v36   ;;  %v249_v35 = vld [vmem:[%s1520_s3 + $0x18] sm:$0xff]  ;;  %v250_v36 = vld [vmem:[%s1520_s3 + $0x20] sm:$0xff] }
  0x38   :  { %682 = vperm.xlu0 %1051, %v653_v37   ;;  %687 = vperm.xlu1 %1052, %v654_v38   ;;  %v251_v37 = vld [vmem:[%s1520_s3 + $0x28] sm:$0xff]  ;;  %v252_v38 = vld [vmem:[%s1520_s3 + $0x30] sm:$0x3] }
  0x3c   :  { %842 = vperm.xlu0 %1051, %v839_v39  }
  0x82   :  { %v67_v49 = vpop.permute.xlu1 %66 }
  0x83   :  { %v57_v40 = vpop.permute.xlu0 %56 }
  0x86   :  { %v72_v55 = vpop.permute.xlu1 %71 }
  0x87   :  { %v62_v45 = vpop.permute.xlu0 %61 }
  0x8a   :  { %v82_v8 = vpop.permute.xlu1 %81 }
  0x8b   :  { %v77_v62 = vpop.permute.xlu0 %76 }
  0x8f   :  { %v87_v17 = vpop.permute.xlu0 %86  ;;  %v263_v39 = vpop.permute.xlu1 %262 }
  0xd9   :  { %v191_v41 = vpop.f32.mrb[0].mxu0 }
  0xda   :  { %v192_v42 = vadd.f32 %v191_v41, %v57_v40  ;;  %v193_v43 = vpop.f32.mrb[1].mxu0 }
  0xdb   :  { %v194_v44 = vadd.f32 %v193_v43, %v57_v40 }
  0xdc   :  { %1053 = vtanh.f32 %v192_v42 }
  0xdd   :  { %v197_v46 = vpop.f32.mrb[2].mxu0  ;;  %1055 = vtanh.f32 %v194_v44  ;;  %v268_v44 = vpop.permute.xlu0 %267 }
  0xde   :  { %v198_v47 = vadd.f32 %v197_v46, %v62_v45  ;;  %v199_v48 = vpop.f32.mrb[3].mxu0 }
  0xdf   :  { %v200_v50 = vadd.f32 %v199_v48, %v62_v45 }
  0xe0   :  { %1057 = vtanh.f32 %v198_v47 }
  0xe1   :  { %1059 = vtanh.f32 %v200_v50  ;;  %v203_v51 = vpop.f32.mrb[4].mxu0 }
  0xe2   :  { %v204_v52 = vadd.f32 %v203_v51, %v67_v49  ;;  %v205_v53 = vpop.f32.mrb[5].mxu0 }
  0xe3   :  { %v206_v54 = vadd.f32 %v205_v53, %v67_v49  ;;  %v273_v49 = vpop.permute.xlu1 %272 }
  0xe4   :  { %1061 = vtanh.f32 %v204_v52 }
  0xe5   :  { %v209_v56 = vpop.f32.mrb[6].mxu0  ;;  %1063 = vtanh.f32 %v206_v54  ;;  %v278_v54 = vpop.permute.xlu0 %277 }
  0xe6   :  { %v210_v57 = vadd.f32 %v209_v56, %v72_v55  ;;  %v211_v58 = vpop.f32.mrb[7].mxu0  ;;  %v1054_v60 = vpop.eup %1053 }
  0xe7   :  { %v212_v59 = vadd.f32 %v211_v58, %v72_v55  ;;  %v1056_v61 = vpop.eup %1055 }
  0xe8   :  { %1065 = vtanh.f32 %v210_v57 }
  0xe9   :  { %1067 = vtanh.f32 %v212_v59  ;;  %v215_v63 = vpop.f32.mrb[8].mxu0 }
  0xea   :  { %v1058_v0 = vpop.eup %1057  ;;  %v216_v1 = vadd.f32 %v215_v63, %v77_v62  ;;  %v217_v3 = vpop.f32.mrb[9].mxu0 }
  0xeb   :  { %v1060_v4 = vpop.eup %1059  ;;  %v218_v5 = vadd.f32 %v217_v3, %v77_v62  ;;  %v1002_v6 = vpack.c.bf16 %v1058_v0, %v1054_v60 }
  0xec   :  { %v1000_v7 = vpack.c.bf16 %v1060_v4, %v1056_v61  ;;  %1069 = vtanh.f32 %v216_v1  ;;  %v283_v61 = vpop.permute.xlu1 %282 }
  0xed   :  { %v221_v9 = vpop.f32.mrb[10].mxu0  ;;  %1071 = vtanh.f32 %v218_v5 }
  0xee   :  { %v222_v10 = vadd.f32 %v221_v9, %v82_v8  ;;  %v223_v11 = vpop.f32.mrb[11].mxu0  ;;  %1001 = vmatprep.subr.bf16.mxu1 %v1000_v7  ;;  %v1062_v13 = vpop.eup %1061 }
  0xef   :  { %v224_v12 = vadd.f32 %v223_v11, %v82_v8  ;;  %1003 = vmatpush1.bf16.msra.mxu1 %v1002_v6  ;;  %v1064_v14 = vpop.eup %1063  ;;  %v288_v7 = vpop.permute.xlu0 %287 }
  0xf0   :  { %1073 = vtanh.f32 %v222_v10 }
  0xf1   :  { %1075 = vtanh.f32 %v224_v12  ;;  %v227_v15 = vpop.f32.mrb[12].mxu0 }
  0xf2   :  { %v1066_v16 = vpop.eup %1065  ;;  %v229_v18 = vpop.f32.mrb[13].mxu0  ;;  %v228_v22 = vadd.f32 %v227_v15, %v87_v17 }
  0xf3   :  { %v1068_v19 = vpop.eup %1067  ;;  %v230_v20 = vadd.f32 %v229_v18, %v87_v17  ;;  %v1006_v21 = vpack.c.bf16 %v1066_v16, %v1062_v13  ;;  %v293_v16 = vpop.permute.xlu1 %292 }
  0xf4   :  { %v1004_v23 = vpack.c.bf16 %v1068_v19, %v1064_v14 }
  0xf5   :  { %1077 = vtanh.f32 %v230_v20 }
  0xf6   :  { %1005 = vmatprep.subr.bf16.mxu1 %v1004_v23  ;;  %v1070_v24 = vpop.eup %1069  ;;  %1079 = vtanh.f32 %v228_v22 }
  0xf7   :  { %1007 = vmatpush1.bf16.msra.mxu1 %v1006_v21  ;;  %v1072_v25 = vpop.eup %1071 }
  0xfa   :  { %v1074_v26 = vpop.eup %1073 }
  0xfb   :  { %v1076_v27 = vpop.eup %1075  ;;  %v1010_v28 = vpack.c.bf16 %v1074_v26, %v1070_v24 }
  0xfc   :  { %v1008_v29 = vpack.c.bf16 %v1076_v27, %v1072_v25 }
  0xfe   :  { %1009 = vmatprep.subr.bf16.mxu1 %v1008_v29 }
  0xff   :  { %v1078_v30 = vpop.eup %1077  ;;  %1011 = vmatpush1.bf16.msra.mxu1 %v1010_v28 }
 0x100   :  { %970 = vmatprep.subr.msk.mxu1 %vm120_vm0, %v1078_v30  ;;  %v1080_v32 = vpop.eup %1079  ;;  %v444_v30 = vld [vmem:[%s1522_s5] sm:$0xff] }
 0x103   :  { %971 = vmatpush1.msk.msra.mxu1 %vm120_vm0, %v1080_v32  ;;  %v445_v32 = vld [vmem:[%s1522_s5 + $0x8] sm:$0xff] }
 0x104   :  { %972 = vmatmul.mubr.msk.f32.vlgmr.msra.gmra.mrb[0].mxu1 %vm295_vm2, %v246_v31 }
 0x105   :  { %393 = vmatprep.mubr.f32.mxu1 %v1197_v2 }
 0x108   :  { %973 = vmatmul.mubr.msk.f32.gmra.mrb[2].mxu1 %vm295_vm2, %v247_v33  ;;  %v446_v33 = vld [vmem:[%s1522_s5 + $0x10] sm:$0xff] }
 0x109   :  { %399 = vmatprep.mubr.f32.mxu1 %v1197_v2 }
 0x10c   :  { %974 = vmatmul.mubr.msk.f32.gmra.mrb[4].mxu1 %vm295_vm2, %v248_v34  ;;  %v447_v34 = vld [vmem:[%s1522_s5 + $0x18] sm:$0xff] }
 0x10d   :  { %405 = vmatprep.mubr.f32.mxu1 %v1197_v2 }
 0x110   :  { %975 = vmatmul.mubr.msk.f32.gmra.mrb[6].mxu1 %vm295_vm2, %v249_v35  ;;  %v448_v35 = vld [vmem:[%s1522_s5 + $0x20] sm:$0xff] }
 0x111   :  { %411 = vmatprep.mubr.f32.mxu1 %v1197_v2 }
 0x114   :  { %976 = vmatmul.mubr.msk.f32.gmra.mrb[8].mxu1 %vm295_vm2, %v250_v36  ;;  %v449_v36 = vld [vmem:[%s1522_s5 + $0x28] sm:$0xff] }
 0x115   :  { %417 = vmatprep.mubr.f32.mxu1 %v1197_v2 }
 0x118   :  { %977 = vmatmul.mubr.msk.f32.gmra.mrb[10].mxu1 %vm295_vm2, %v251_v37  ;;  %v450_v37 = vld [vmem:[%s1522_s5 + $0x30] sm:$0x3] }
 0x119   :  { %423 = vmatprep.mubr.f32.mxu1 %v1197_v2 }
 0x11c   :  { %978 = vmatmul.mubr.msk.f32.gmra.mrb[12].mxu1 %vm295_vm2, %v252_v38  ;;  %v461_v38 = vpop.permute.xlu0 %460 }
 0x11d   :  { %781 = vmatprep.mubr.f32.mxu1 %v1197_v2 }
 0x1d7   :  { %v389_v40 = vpop.f32.mrb[0].mxu1 }
 0x1d8   :  { %v390_v41 = vadd.f32 %v389_v40, %v263_v39  ;;  %v391_v42 = vpop.f32.mrb[1].mxu1 }
 0x1d9   :  { %v392_v43 = vadd.f32 %v391_v42, %v263_v39 }
 0x1da   :  { %1081 = vtanh.f32 %v390_v41 }
 0x1db   :  { %v395_v45 = vpop.f32.mrb[2].mxu1  ;;  %1083 = vtanh.f32 %v392_v43  ;;  %v466_v43 = vpop.permute.xlu1 %465 }
 0x1dc   :  { %v396_v46 = vadd.f32 %v395_v45, %v268_v44  ;;  %v397_v47 = vpop.f32.mrb[3].mxu1 }
 0x1dd   :  { %v398_v48 = vadd.f32 %v397_v47, %v268_v44 }
 0x1de   :  { %1085 = vtanh.f32 %v396_v46 }
 0x1df   :  { %1087 = vtanh.f32 %v398_v48  ;;  %v401_v50 = vpop.f32.mrb[4].mxu1  ;;  %v471_v48 = vpop.permute.xlu0 %470 }
 0x1e0   :  { %v402_v51 = vadd.f32 %v401_v50, %v273_v49  ;;  %v403_v52 = vpop.f32.mrb[5].mxu1 }
 0x1e1   :  { %v404_v53 = vadd.f32 %v403_v52, %v273_v49 }
 0x1e2   :  { %1089 = vtanh.f32 %v402_v51 }
 0x1e3   :  { %v407_v55 = vpop.f32.mrb[6].mxu1  ;;  %1091 = vtanh.f32 %v404_v53  ;;  %v476_v53 = vpop.permute.xlu1 %475 }
 0x1e4   :  { %v408_v56 = vadd.f32 %v407_v55, %v278_v54  ;;  %v409_v57 = vpop.f32.mrb[7].mxu1  ;;  %v1082_v59 = vpop.eup %1081 }
 0x1e5   :  { %v410_v58 = vadd.f32 %v409_v57, %v278_v54  ;;  %v1084_v60 = vpop.eup %1083 }
 0x1e6   :  { %1093 = vtanh.f32 %v408_v56 }
 0x1e7   :  { %1095 = vtanh.f32 %v410_v58  ;;  %v413_v62 = vpop.f32.mrb[8].mxu1 }
 0x1e8   :  { %v1086_v63 = vpop.eup %1085  ;;  %v414_v0 = vadd.f32 %v413_v62, %v283_v61  ;;  %v415_v1 = vpop.f32.mrb[9].mxu1 }
 0x1e9   :  { %v1088_v3 = vpop.eup %1087  ;;  %v416_v4 = vadd.f32 %v415_v1, %v283_v61  ;;  %v1014_v5 = vpack.c.bf16 %v1086_v63, %v1082_v59 }
 0x1ea   :  { %v1012_v6 = vpack.c.bf16 %v1088_v3, %v1084_v60  ;;  %1097 = vtanh.f32 %v414_v0  ;;  %v481_v60 = vpop.permute.xlu0 %480 }
 0x1eb   :  { %v419_v8 = vpop.f32.mrb[10].mxu1  ;;  %1099 = vtanh.f32 %v416_v4 }
 0x1ec   :  { %v420_v9 = vadd.f32 %v419_v8, %v288_v7  ;;  %v421_v10 = vpop.f32.mrb[11].mxu1  ;;  %1013 = vmatprep.subr.bf16.mxu0 %v1012_v6  ;;  %v1090_v12 = vpop.eup %1089 }
 0x1ed   :  { %v422_v11 = vadd.f32 %v421_v10, %v288_v7  ;;  %1015 = vmatpush1.bf16.msra.mxu0 %v1014_v5  ;;  %v1092_v13 = vpop.eup %1091  ;;  %v486_v6 = vpop.permute.xlu1 %485 }
 0x1ee   :  { %1101 = vtanh.f32 %v420_v9 }
 0x1ef   :  { %1103 = vtanh.f32 %v422_v11  ;;  %v425_v14 = vpop.f32.mrb[12].mxu1 }
 0x1f0   :  { %v1094_v15 = vpop.eup %1093  ;;  %v427_v17 = vpop.f32.mrb[13].mxu1  ;;  %v426_v21 = vadd.f32 %v425_v14, %v293_v16 }
 0x1f1   :  { %v1096_v18 = vpop.eup %1095  ;;  %v428_v19 = vadd.f32 %v427_v17, %v293_v16  ;;  %v1018_v20 = vpack.c.bf16 %v1094_v15, %v1090_v12  ;;  %v491_v15 = vpop.permute.xlu0 %490 }
 0x1f2   :  { %v1016_v22 = vpack.c.bf16 %v1096_v18, %v1092_v13 }
 0x1f3   :  { %1105 = vtanh.f32 %v428_v19 }
 0x1f4   :  { %1017 = vmatprep.subr.bf16.mxu0 %v1016_v22  ;;  %v1098_v23 = vpop.eup %1097  ;;  %1107 = vtanh.f32 %v426_v21 }
 0x1f5   :  { %1019 = vmatpush1.bf16.msra.mxu0 %v1018_v20  ;;  %v1100_v24 = vpop.eup %1099 }
 0x1f8   :  { %v1102_v25 = vpop.eup %1101 }
 0x1f9   :  { %v1104_v26 = vpop.eup %1103  ;;  %v1022_v27 = vpack.c.bf16 %v1102_v25, %v1098_v23 }
 0x1fa   :  { %v1020_v28 = vpack.c.bf16 %v1104_v26, %v1100_v24 }
 0x1fc   :  { %1021 = vmatprep.subr.bf16.mxu0 %v1020_v28 }
 0x1fd   :  { %v1106_v29 = vpop.eup %1105  ;;  %1023 = vmatpush1.bf16.msra.mxu0 %v1022_v27 }
 0x1fe   :  { %979 = vmatprep.subr.msk.mxu0 %vm120_vm0, %v1106_v29  ;;  %v1108_v31 = vpop.eup %1107  ;;  %v641_v29 = vld [vmem:[%s1524_s7] sm:$0xff] }
 0x201   :  { %980 = vmatpush1.msk.msra.mxu0 %vm120_vm0, %v1108_v31  ;;  %v642_v31 = vld [vmem:[%s1524_s7 + $0x8] sm:$0xff] }
 0x202   :  { %981 = vmatmul.mubr.msk.f32.vlgmr.msra.gmra.mrb[14].mxu0 %vm295_vm2, %v444_v30 }
 0x203   :  { %590 = vmatprep.mubr.f32.mxu0 %v1197_v2 }
 0x206   :  { %982 = vmatmul.mubr.msk.f32.gmra.mrb[16].mxu0 %vm295_vm2, %v445_v32  ;;  %v643_v32 = vld [vmem:[%s1524_s7 + $0x10] sm:$0xff] }
 0x207   :  { %596 = vmatprep.mubr.f32.mxu0 %v1197_v2 }
 0x20a   :  { %983 = vmatmul.mubr.msk.f32.gmra.mrb[18].mxu0 %vm295_vm2, %v446_v33  ;;  %v644_v33 = vld [vmem:[%s1524_s7 + $0x18] sm:$0xff] }
 0x20b   :  { %602 = vmatprep.mubr.f32.mxu0 %v1197_v2 }
 0x20e   :  { %984 = vmatmul.mubr.msk.f32.gmra.mrb[20].mxu0 %vm295_vm2, %v447_v34  ;;  %v645_v34 = vld [vmem:[%s1524_s7 + $0x20] sm:$0xff] }
 0x20f   :  { %608 = vmatprep.mubr.f32.mxu0 %v1197_v2 }
 0x212   :  { %985 = vmatmul.mubr.msk.f32.gmra.mrb[22].mxu0 %vm295_vm2, %v448_v35  ;;  %v646_v35 = vld [vmem:[%s1524_s7 + $0x28] sm:$0xff] }
 0x213   :  { %614 = vmatprep.mubr.f32.mxu0 %v1197_v2 }
 0x216   :  { %986 = vmatmul.mubr.msk.f32.gmra.mrb[24].mxu0 %vm295_vm2, %v449_v36  ;;  %v647_v36 = vld [vmem:[%s1524_s7 + $0x30] sm:$0x3] }
 0x217   :  { %620 = vmatprep.mubr.f32.mxu0 %v1197_v2 }
 0x21a   :  { %987 = vmatmul.mubr.msk.f32.gmra.mrb[26].mxu0 %vm295_vm2, %v450_v37  ;;  %v658_v37 = vpop.permute.xlu1 %657 }
 0x21b   :  { %918 = vmatprep.mubr.f32.mxu0 %v1197_v2 }
 0x2d5   :  { %v586_v39 = vpop.f32.mrb[14].mxu0 }
 0x2d6   :  { %v587_v40 = vadd.f32 %v586_v39, %v461_v38  ;;  %v588_v41 = vpop.f32.mrb[15].mxu0 }
 0x2d7   :  { %v589_v42 = vadd.f32 %v588_v41, %v461_v38 }
 0x2d8   :  { %1109 = vtanh.f32 %v587_v40 }
 0x2d9   :  { %v592_v44 = vpop.f32.mrb[16].mxu0  ;;  %1111 = vtanh.f32 %v589_v42  ;;  %v663_v42 = vpop.permute.xlu0 %662 }
 0x2da   :  { %v593_v45 = vadd.f32 %v592_v44, %v466_v43  ;;  %v594_v46 = vpop.f32.mrb[17].mxu0 }
 0x2db   :  { %v595_v47 = vadd.f32 %v594_v46, %v466_v43 }
 0x2dc   :  { %1113 = vtanh.f32 %v593_v45 }
 0x2dd   :  { %1115 = vtanh.f32 %v595_v47  ;;  %v598_v49 = vpop.f32.mrb[18].mxu0 }
 0x2de   :  { %v599_v50 = vadd.f32 %v598_v49, %v471_v48  ;;  %v600_v51 = vpop.f32.mrb[19].mxu0 }
 0x2df   :  { %v601_v52 = vadd.f32 %v600_v51, %v471_v48  ;;  %v673_v51 = vpop.permute.xlu0 %672 }
 0x2e0   :  { %1117 = vtanh.f32 %v599_v50 }
 0x2e1   :  { %v604_v54 = vpop.f32.mrb[20].mxu0  ;;  %1119 = vtanh.f32 %v601_v52 }
 0x2e2   :  { %v605_v55 = vadd.f32 %v604_v54, %v476_v53  ;;  %v606_v56 = vpop.f32.mrb[21].mxu0  ;;  %v1110_v58 = vpop.eup %1109 }
 0x2e3   :  { %v607_v57 = vadd.f32 %v606_v56, %v476_v53  ;;  %v1112_v59 = vpop.eup %1111 }
 0x2e4   :  { %1121 = vtanh.f32 %v605_v55 }
 0x2e5   :  { %1123 = vtanh.f32 %v607_v57  ;;  %v610_v61 = vpop.f32.mrb[22].mxu0 }
 0x2e6   :  { %v1114_v62 = vpop.eup %1113  ;;  %v611_v63 = vadd.f32 %v610_v61, %v481_v60  ;;  %v612_v0 = vpop.f32.mrb[23].mxu0 }
 0x2e7   :  { %v1116_v1 = vpop.eup %1115  ;;  %v613_v3 = vadd.f32 %v612_v0, %v481_v60  ;;  %v1026_v4 = vpack.c.bf16 %v1114_v62, %v1110_v58 }
 0x2e8   :  { %v1024_v5 = vpack.c.bf16 %v1116_v1, %v1112_v59  ;;  %1125 = vtanh.f32 %v611_v63 }
 0x2e9   :  { %v616_v7 = vpop.f32.mrb[24].mxu0  ;;  %1127 = vtanh.f32 %v613_v3 }
 0x2ea   :  { %v617_v8 = vadd.f32 %v616_v7, %v486_v6  ;;  %v618_v9 = vpop.f32.mrb[25].mxu0  ;;  %1025 = vmatprep.subr.bf16.mxu1 %v1024_v5  ;;  %v1118_v11 = vpop.eup %1117 }
 0x2eb   :  { %v619_v10 = vadd.f32 %v618_v9, %v486_v6  ;;  %1027 = vmatpush1.bf16.msra.mxu1 %v1026_v4  ;;  %v1120_v12 = vpop.eup %1119  ;;  %v683_v4 = vpop.permute.xlu0 %682 }
 0x2ec   :  { %1129 = vtanh.f32 %v617_v8 }
 0x2ed   :  { %1131 = vtanh.f32 %v619_v10  ;;  %v622_v13 = vpop.f32.mrb[26].mxu0 }
 0x2ee   :  { %v1122_v14 = vpop.eup %1121  ;;  %v624_v16 = vpop.f32.mrb[27].mxu0  ;;  %v623_v20 = vadd.f32 %v622_v13, %v491_v15 }
 0x2ef   :  { %v1124_v17 = vpop.eup %1123  ;;  %v625_v18 = vadd.f32 %v624_v16, %v491_v15  ;;  %v1030_v19 = vpack.c.bf16 %v1122_v14, %v1118_v11 }
 0x2f0   :  { %v1028_v21 = vpack.c.bf16 %v1124_v17, %v1120_v12 }
 0x2f1   :  { %1133 = vtanh.f32 %v625_v18 }
 0x2f2   :  { %1029 = vmatprep.subr.bf16.mxu1 %v1028_v21  ;;  %v1126_v22 = vpop.eup %1125  ;;  %1135 = vtanh.f32 %v623_v20 }
 0x2f3   :  { %1031 = vmatpush1.bf16.msra.mxu1 %v1030_v19  ;;  %v1128_v23 = vpop.eup %1127 }
 0x2f6   :  { %v1130_v24 = vpop.eup %1129 }
 0x2f7   :  { %v1132_v25 = vpop.eup %1131  ;;  %v1034_v26 = vpack.c.bf16 %v1130_v24, %v1126_v22 }
 0x2f8   :  { %v1032_v27 = vpack.c.bf16 %v1132_v25, %v1128_v23 }
 0x2fa   :  { %1033 = vmatprep.subr.bf16.mxu1 %v1032_v27  ;;  %v838_v27 = vld [vmem:[%s1526_s9] sm:$0xf]  ;;  %s1199_s9 = smov [#allocation2]  }
 0x2fb   :  { %v1134_v28 = vpop.eup %1133  ;;  %1035 = vmatpush1.bf16.msra.mxu1 %v1034_v26  ;;  %s952_s15 = sshll.u32 %s1199_s9, 4  ;;  %s953_s15 = int_to_ptr.vmem [resolvable:$true] %s952_s15 }
 0x2fc   :  { %988 = vmatprep.subr.msk.mxu1 %vm120_vm0, %v1134_v28  ;;  %v1136_v30 = vpop.eup %1135  ;;  %s1173_s16 = scalar_lea.vmem %s953_s15, 128  ;;  %p1178_p1 = scmp.lt.s32.totalorder %s953_s15, %s953_s15 }
 0x2fd   :  { %p1174_p0 = scmp.ne.s32.totalorder %s953_s15, %s1173_s16  ;;  %p1179_p2 = scmp.lt.s32.totalorder %s1173_s16, %s1173_s16 }
 0x2ff   :  { %989 = vmatpush1.msk.msra.mxu1 %vm120_vm0, %v1136_v30  ;;  %p1180_p3 = por %p1179_p2, %p1178_p1 }
 0x300   :  { %990 = vmatmul.mubr.msk.f32.vlgmr.msra.gmra.mrb[14].mxu1 %vm295_vm2, %v641_v29  ;;  %v843_v29 = vpop.permute.xlu0 %842 }
 0x301   :  { %787 = vmatprep.mubr.f32.mxu1 %v1197_v2  ;;  %p1181_p4 = pnand %p1180_p3, %p1174_p0 }
 0x304   :  { %991 = vmatmul.mubr.msk.f32.gmra.mrb[16].mxu1 %vm295_vm2, %v642_v31 }
 0x305   :  { %793 = vmatprep.mubr.f32.mxu1 %v1197_v2 }
 0x308   :  { %992 = vmatmul.mubr.msk.f32.gmra.mrb[18].mxu1 %vm295_vm2, %v643_v32 }
 0x309   :  { %799 = vmatprep.mubr.f32.mxu1 %v1197_v2 }
 0x30c   :  { %993 = vmatmul.mubr.msk.f32.gmra.mrb[20].mxu1 %vm295_vm2, %v644_v33 }
 0x30d   :  { %805 = vmatprep.mubr.f32.mxu1 %v1197_v2 }
 0x310   :  { %994 = vmatmul.mubr.msk.f32.gmra.mrb[22].mxu1 %vm295_vm2, %v645_v34 }
 0x311   :  { %811 = vmatprep.mubr.f32.mxu1 %v1197_v2 }
 0x314   :  { %995 = vmatmul.mubr.msk.f32.gmra.mrb[24].mxu1 %vm295_vm2, %v646_v35 }
 0x315   :  { %817 = vmatprep.mubr.f32.mxu1 %v1197_v2  ;;  %v668_v2 = vpop.permute.xlu1 %667 }
 0x318   :  { %996 = vmatmul.mubr.msk.f32.gmra.mrb[26].mxu1 %vm295_vm2, %v647_v36  ;;  %v925_v36 = vlaneseq }
 0x319   :  { %v678_v58 = vpop.permute.xlu1 %677 }
 0x31d   :  { %v688_v13 = vpop.permute.xlu1 %687 }
 0x3d3   :  { %v783_v38 = vpop.f32.mrb[14].mxu1 }
 0x3d4   :  { %v784_v39 = vadd.f32 %v783_v38, %v658_v37  ;;  %v785_v40 = vpop.f32.mrb[15].mxu1 }
 0x3d5   :  { %v786_v41 = vadd.f32 %v785_v40, %v658_v37  ;;  %v926_v37 = vshrl.u32 %v925_v36, 7 }
 0x3d6   :  { %1137 = vtanh.f32 %v784_v39 }
 0x3d7   :  { %v789_v43 = vpop.f32.mrb[16].mxu1  ;;  %1139 = vtanh.f32 %v786_v41  ;;  %vm936_vm3 = vcmp.eq.s32.totalorder %v926_v37, 3  ;;  %vm935_vm4 = vcmp.le.s32.totalorder %v926_v37, 1 }
 0x3d8   :  { %v790_v44 = vadd.f32 %v789_v43, %v663_v42  ;;  %v791_v45 = vpop.f32.mrb[17].mxu1 }
 0x3d9   :  { %v792_v46 = vadd.f32 %v791_v45, %v663_v42 }
 0x3da   :  { %1141 = vtanh.f32 %v790_v44 }
 0x3db   :  { %1143 = vtanh.f32 %v792_v46  ;;  %v795_v47 = vpop.f32.mrb[18].mxu1 }
 0x3dc   :  { %v796_v48 = vadd.f32 %v795_v47, %v668_v2  ;;  %v797_v49 = vpop.f32.mrb[19].mxu1 }
 0x3dd   :  { %v798_v50 = vadd.f32 %v797_v49, %v668_v2 }
 0x3de   :  { %1145 = vtanh.f32 %v796_v48 }
 0x3df   :  { %v801_v52 = vpop.f32.mrb[20].mxu1  ;;  %1147 = vtanh.f32 %v798_v50 }
 0x3e0   :  { %v802_v53 = vadd.f32 %v801_v52, %v673_v51  ;;  %v803_v54 = vpop.f32.mrb[21].mxu1  ;;  %v1138_v56 = vpop.eup %1137 }
 0x3e1   :  { %v804_v55 = vadd.f32 %v803_v54, %v673_v51  ;;  %v1140_v57 = vpop.eup %1139 }
 0x3e2   :  { %1149 = vtanh.f32 %v802_v53 }
 0x3e3   :  { %1151 = vtanh.f32 %v804_v55  ;;  %v807_v59 = vpop.f32.mrb[22].mxu1 }
 0x3e4   :  { %v1142_v60 = vpop.eup %1141  ;;  %v808_v61 = vadd.f32 %v807_v59, %v678_v58  ;;  %v809_v62 = vpop.f32.mrb[23].mxu1 }
 0x3e5   :  { %v1144_v63 = vpop.eup %1143  ;;  %v810_v0 = vadd.f32 %v809_v62, %v678_v58  ;;  %v1038_v1 = vpack.c.bf16 %v1142_v60, %v1138_v56 }
 0x3e6   :  { %v1036_v3 = vpack.c.bf16 %v1144_v63, %v1140_v57  ;;  %1153 = vtanh.f32 %v808_v61 }
 0x3e7   :  { %v813_v5 = vpop.f32.mrb[24].mxu1  ;;  %1155 = vtanh.f32 %v810_v0 }
 0x3e8   :  { %v814_v6 = vadd.f32 %v813_v5, %v683_v4  ;;  %v815_v7 = vpop.f32.mrb[25].mxu1  ;;  %1037 = vmatprep.subr.bf16.mxu0 %v1036_v3  ;;  %v1146_v9 = vpop.eup %1145 }
 0x3e9   :  { %v816_v8 = vadd.f32 %v815_v7, %v683_v4  ;;  %1039 = vmatpush1.bf16.msra.mxu0 %v1038_v1  ;;  %v1148_v10 = vpop.eup %1147 }
 0x3ea   :  { %1157 = vtanh.f32 %v814_v6 }
 0x3eb   :  { %1159 = vtanh.f32 %v816_v8  ;;  %v819_v11 = vpop.f32.mrb[26].mxu1 }
 0x3ec   :  { %v1150_v12 = vpop.eup %1149  ;;  %v821_v14 = vpop.f32.mrb[27].mxu1  ;;  %v820_v18 = vadd.f32 %v819_v11, %v688_v13 }
 0x3ed   :  { %v1152_v15 = vpop.eup %1151  ;;  %v822_v16 = vadd.f32 %v821_v14, %v688_v13  ;;  %v1042_v17 = vpack.c.bf16 %v1150_v12, %v1146_v9 }
 0x3ee   :  { %v1040_v19 = vpack.c.bf16 %v1152_v15, %v1148_v10 }
 0x3ef   :  { %1161 = vtanh.f32 %v822_v16 }
 0x3f0   :  { %1041 = vmatprep.subr.bf16.mxu0 %v1040_v19  ;;  %v1154_v20 = vpop.eup %1153  ;;  %1163 = vtanh.f32 %v820_v18 }
 0x3f1   :  { %1043 = vmatpush1.bf16.msra.mxu0 %v1042_v17  ;;  %v1156_v21 = vpop.eup %1155 }
 0x3f4   :  { %v1158_v22 = vpop.eup %1157 }
 0x3f5   :  { %v1160_v23 = vpop.eup %1159  ;;  %v1046_v24 = vpack.c.bf16 %v1158_v22, %v1154_v20 }
 0x3f6   :  { %v1044_v25 = vpack.c.bf16 %v1160_v23, %v1156_v21 }
 0x3f8   :  { %1045 = vmatprep.subr.bf16.mxu0 %v1044_v25 }
 0x3f9   :  { %v1162_v26 = vpop.eup %1161  ;;  %1047 = vmatpush1.bf16.msra.mxu0 %v1046_v24 }
 0x3fa   :  { %997 = vmatprep.subr.msk.mxu0 %vm120_vm0, %v1162_v26  ;;  %v1164_v28 = vpop.eup %1163 }
 0x3fd   :  { %998 = vmatpush1.msk.msra.mxu0 %vm120_vm0, %v1164_v28 }
 0x3fe   :  { %999 = vmatmul.mubr.msk.f32.vlgmr.msra.gmra.mrb[28].mxu0 %vm295_vm2, %v838_v27 }
 0x4d1   :  { %v920_v30 = vpop.f32.mrb[28].mxu0 }
 0x4d2   :  { %v921_v31 = vadd.f32 %v920_v30, %v843_v29  ;;  %v922_v32 = vpop.f32.mrb[29].mxu0 }
 0x4d3   :  { %v923_v33 = vadd.f32 %v922_v32, %v843_v29 }
 0x4d4   :  { %v927_v34 = vmul.f32 1.442695, %v921_v31  ;;  %1165 = vtanh.f32 %v921_v31 }
 0x4d5   :  { %v929_v35 = vmul.f32 1.442695, %v923_v33  ;;  %1167 = vtanh.f32 %v923_v33 }
 0x4d6   :  { %1169 = vpow2.f32 %v927_v34 }
 0x4d7   :  { %1171 = vpow2.f32 %v929_v35 }
 0x4de   :  { %v1166_v38 = vpop.eup %1165 }
 0x4df   :  { %v1168_v39 = vpop.eup %1167  ;;  %v933_v40 = vmul.f32 1.5707964, %v1166_v38 }
 0x4e0   :  { %v1170_v41 = vpop.eup %1169  ;;  %v934_v42 = vmul.f32 1.5707964, %v1168_v39 }
 0x4e1   :  { %v1172_v43 = vpop.eup %1171  ;;  %v937_v44 = vsel %vm936_vm3, %v933_v40, %v921_v31 }
 0x4e2   :  { %v938_v45 = vsel %vm936_vm3, %v934_v42, %v923_v33  ;;  %v939_v46 = vsel %vm935_vm4, %v1170_v41, %v937_v44 }
 0x4e3   :  { %v940_v2 = vsel %vm935_vm4, %v1172_v43, %v938_v45 }
 0x4e4   :  { %v943_v47 = vcombine.low %v939_v46, %v940_v2 }
 0x4e6   :  { %945 = vst [vmem:[#allocation2] sm:$0xff] %v943_v47 }
 0x4e7   :  { %1184 = shalt.err (!%p1181_p4)
}
 0x4e8   :  { %s1185_s6 = scalar_lea.hbm %s1528_s11, 128 }
 0x4e9   :  { %p1186_p5 = scmp.ne.s32.totalorder %s1528_s11, %s1185_s6  ;;  %p1189_p6 = scmp.lt.u32.totalorder %s1185_s6, %s1528_s11 }
 0x4eb   :  { %p1191_p7 = pnand %p1189_p6, %p1186_p5 }
 0x4ed   :  { %1194 = shalt.err (!%p1191_p7)
}
 0x4ee   :  { %955 = dma.vmem_to_hbm [thread:$0]  %s953_s15, 128, %s1528_s11, [#allocation3]  }
 0x4ef   :  { %1195 = dma.done.wait [#allocation3], 128  }
 0x4f0   :  { %1196 = vsyncadd [#allocation3], 4294967168 }
 0x4f1   :  { %959 = vsyncpa [#allocation3], 1 }

</bundles_post_ra>
